<compile_context>
chip_gen: v5e
topology: v5e:2x2
jax: 0.10.0
libtpu: 0.0.40
codegen_flags: <defaults>
</compile_context>

<pallas_src>
import jax
import jax.numpy as jnp
from jax.experimental import pallas as pl
from jax.experimental.pallas import tpu as pltpu


def classifier_kernel(x_ref, w1_ref, b1_ref, w2_ref, b2_ref, w3_ref, b3_ref,
                      o_ref):
    # x tile: [tb, 61] f32, native layout straight from HBM.
    x = x_ref[...]

    # Layer 1: Linear(61 -> 11) + ReLU  (weights pre-transposed to [in, out]).
    h1 = jnp.dot(x, w1_ref[...], preferred_element_type=jnp.float32) + b1_ref[...]
    h1 = jnp.maximum(h1, 0.0)                                    # [tb, 11]

    # Layer 2: Linear(11 -> 5) + ReLU
    h2 = jnp.dot(h1, w2_ref[...], preferred_element_type=jnp.float32) + b2_ref[...]
    h2 = jnp.maximum(h2, 0.0)                                    # [tb, 5]

    # Layer 3: Linear(5 -> 1) + Sigmoid (exp-safe: no inf for large |z|).
    z = jnp.dot(h2, w3_ref[...], preferred_element_type=jnp.float32) + b3_ref[...]
    e = jnp.exp(-jnp.abs(z))                                     # EUP
    num = jnp.where(z >= 0.0, 1.0, e)
    o_ref[...] = (num / (1.0 + e)).astype(o_ref.dtype)           # [tb, 1]


def _round_up(n, m):
    return ((n + m - 1) // m) * m


def classifier_forward(x, params, *, tile_b=8192):
    """x: [B, 61] float32 (native layout, streamed as-is).

    params PyTorch-style: W [out, in], b [out].
    Returns [B, 1] float32 (the module's output layout), no extra copies.
    """
    w1, b1, w2, b2, w3, b3 = params
    batch, feat = x.shape

    # Batch tile sits on the sublane axis -> must be a multiple of 8.
    # No transpose / cast / pad of x: the last grid tile may read past the
    # end of the array (values unused per-row-independent math is garbage-in,
    # garbage-out for those rows) and its OOB writes are discarded.
    tb = _round_up(min(tile_b, _round_up(batch, 8)), 8)
    num_tiles = pl.cdiv(batch, tb)

    # Tiny weight tensors: present them matmul-ready ([in, out]) and biases
    # as [1, out] rows.  Negligible cost; avoids per-step transposes.
    w1t, w2t, w3t = w1.T, w2.T, w3.T
    b1r, b2r, b3r = b1.reshape(1, -1), b2.reshape(1, -1), b3.reshape(1, -1)

    return pl.pallas_call(
        classifier_kernel,
        out_shape=jax.ShapeDtypeStruct((batch, 1), jnp.float32),
        grid=(num_tiles,),
        in_specs=[
            pl.BlockSpec((tb, feat), lambda i: (i, 0)),      # pipelined x tile
            pl.BlockSpec(w1t.shape, lambda i: (0, 0)),       # VMEM-resident consts
            pl.BlockSpec(b1r.shape, lambda i: (0, 0)),
            pl.BlockSpec(w2t.shape, lambda i: (0, 0)),
            pl.BlockSpec(b2r.shape, lambda i: (0, 0)),
            pl.BlockSpec(w3t.shape, lambda i: (0, 0)),
            pl.BlockSpec(b3r.shape, lambda i: (0, 0)),
        ],
        out_specs=pl.BlockSpec((tb, 1), lambda i: (i, 0)),   # native [B, 1] output
        compiler_params=pltpu.CompilerParams(
            dimension_semantics=("parallel",),
            vmem_limit_bytes=48 * 1024 * 1024,
        ),
    )(x, w1t, b1r, w2t, b2r, w3t, b3r)


def init_params(key):
    # Shapes match nn.Linear: l1 Linear(61,11), l2 Linear(11,5), l3 Linear(5,1).
    # Weights [out, in], biases [out]  (PyTorch layout).
    k1, k2, k3, k4, k5, k6 = jax.random.split(key, 6)
    w1 = jax.random.normal(k1, (11, 61), jnp.float32) * 0.1
    b1 = jax.random.normal(k2, (11,), jnp.float32) * 0.1
    w2 = jax.random.normal(k3, (5, 11), jnp.float32) * 0.1
    b2 = jax.random.normal(k4, (5,), jnp.float32) * 0.1
    w3 = jax.random.normal(k5, (1, 5), jnp.float32) * 0.1
    b3 = jax.random.normal(k6, (1,), jnp.float32) * 0.1
    return (w1, b1, w2, b2, w3, b3)


def reference_forward(x, params):
    # Pure-JAX reference, identical to the PyTorch module's forward.
    w1, b1, w2, b2, w3, b3 = params
    h1 = jnp.maximum(x @ w1.T + b1, 0.0)
    h2 = jnp.maximum(h1 @ w2.T + b2, 0.0)
    return jax.nn.sigmoid(h2 @ w3.T + b3)


if __name__ == "__main__":
    key = jax.random.PRNGKey(0)
    kx, kp = jax.random.split(key)
    params = init_params(kp)

    # Small batches; 4 exercises sub-8 padding, 300 exercises a partial tile.
    for batch in (4, 8, 300):
        x = jax.random.normal(jax.random.fold_in(kx, batch), (batch, 61),
                              jnp.float32)

        out = jax.block_until_ready(classifier_forward(x, params))
        ref = reference_forward(x, params)

        assert out.shape == (batch, 1)
        assert jnp.allclose(out, ref, atol=2e-3, rtol=2e-3), \
            float(jnp.max(jnp.abs(out - ref)))

    print("KERNEL_OK")
</pallas_src>

<mosaic_0001>
module attributes {stable_mosaic.version = 11 : i64} {
  func.func @classifier_kernel(%arg0: i32, %arg1: memref<8x61xf32, #tpu.memory_space<vmem>>, %arg2: memref<61x11xf32, #tpu.memory_space<vmem>>, %arg3: memref<1x11xf32, #tpu.memory_space<vmem>>, %arg4: memref<11x5xf32, #tpu.memory_space<vmem>>, %arg5: memref<1x5xf32, #tpu.memory_space<vmem>>, %arg6: memref<5x1xf32, #tpu.memory_space<vmem>>, %arg7: memref<1x1xf32, #tpu.memory_space<vmem>>, %arg8: memref<8x1xf32, #tpu.memory_space<vmem>>) attributes {dimension_semantics = [#tpu.dimension_semantics<parallel>], iteration_bounds = array<i64: 1>, scalar_prefetch = 0 : i64, scratch_operands = 0 : i64, tpu.core_type = #tpu.core_type<tc>, window_params = [{transform_indices = @transform_0, window_bounds = array<i64: 8, 61>}, {pipeline_mode = #tpu.pipeline_mode<synchronous>, transform_indices = @transform_1, window_bounds = array<i64: 61, 11>}, {pipeline_mode = #tpu.pipeline_mode<synchronous>, transform_indices = @transform_2, window_bounds = array<i64: 1, 11>}, {pipeline_mode = #tpu.pipeline_mode<synchronous>, transform_indices = @transform_3, window_bounds = array<i64: 11, 5>}, {pipeline_mode = #tpu.pipeline_mode<synchronous>, transform_indices = @transform_4, window_bounds = array<i64: 1, 5>}, {pipeline_mode = #tpu.pipeline_mode<synchronous>, transform_indices = @transform_5, window_bounds = array<i64: 5, 1>}, {pipeline_mode = #tpu.pipeline_mode<synchronous>, transform_indices = @transform_6, window_bounds = array<i64: 1, 1>}, {transform_indices = @transform_7, window_bounds = array<i64: 8, 1>}]} {
    %c0 = arith.constant 0 : index
    %c0_0 = arith.constant 0 : index
    %0 = vector.load %arg1[%c0, %c0_0] : memref<8x61xf32, #tpu.memory_space<vmem>>, vector<8x61xf32>
    %c0_1 = arith.constant 0 : index
    %c0_2 = arith.constant 0 : index
    %1 = vector.load %arg2[%c0_1, %c0_2] : memref<61x11xf32, #tpu.memory_space<vmem>>, vector<61x11xf32>
    %cst = arith.constant dense<0.000000e+00> : vector<8x11xf32>
    %2 = tpu.matmul %0, %1, %cst {dimension_numbers = #tpu.dot_dimension_numbers<[1], [0], [0], [1], [0, 0, 1, 1], [], []>} : vector<8x61xf32>, vector<61x11xf32>, vector<8x11xf32> -> vector<8x11xf32>
    %c0_3 = arith.constant 0 : index
    %c0_4 = arith.constant 0 : index
    %3 = vector.load %arg3[%c0_3, %c0_4] : memref<1x11xf32, #tpu.memory_space<vmem>>, vector<1x11xf32>
    %4 = vector.broadcast %3 : vector<1x11xf32> to vector<8x11xf32>
    %5 = arith.addf %2, %4 : vector<8x11xf32>
    %cst_5 = arith.constant 0.000000e+00 : f32
    %6 = vector.broadcast %cst_5 : f32 to vector<8x11xf32>
    %7 = arith.maximumf %5, %6 : vector<8x11xf32>
    %c0_6 = arith.constant 0 : index
    %c0_7 = arith.constant 0 : index
    %8 = vector.load %arg4[%c0_6, %c0_7] : memref<11x5xf32, #tpu.memory_space<vmem>>, vector<11x5xf32>
    %cst_8 = arith.constant dense<0.000000e+00> : vector<8x5xf32>
    %9 = tpu.matmul %7, %8, %cst_8 {dimension_numbers = #tpu.dot_dimension_numbers<[1], [0], [0], [1], [0, 0, 1, 1], [], []>} : vector<8x11xf32>, vector<11x5xf32>, vector<8x5xf32> -> vector<8x5xf32>
    %c0_9 = arith.constant 0 : index
    %c0_10 = arith.constant 0 : index
    %10 = vector.load %arg5[%c0_9, %c0_10] : memref<1x5xf32, #tpu.memory_space<vmem>>, vector<1x5xf32>
    %11 = vector.broadcast %10 : vector<1x5xf32> to vector<8x5xf32>
    %12 = arith.addf %9, %11 : vector<8x5xf32>
    %cst_11 = arith.constant 0.000000e+00 : f32
    %13 = vector.broadcast %cst_11 : f32 to vector<8x5xf32>
    %14 = arith.maximumf %12, %13 : vector<8x5xf32>
    %c0_12 = arith.constant 0 : index
    %c0_13 = arith.constant 0 : index
    %15 = vector.load %arg6[%c0_12, %c0_13] : memref<5x1xf32, #tpu.memory_space<vmem>>, vector<5x1xf32>
    %cst_14 = arith.constant dense<0.000000e+00> : vector<8x1xf32>
    %16 = tpu.matmul %14, %15, %cst_14 {dimension_numbers = #tpu.dot_dimension_numbers<[1], [0], [0], [1], [0, 0, 1, 1], [], []>} : vector<8x5xf32>, vector<5x1xf32>, vector<8x1xf32> -> vector<8x1xf32>
    %c0_15 = arith.constant 0 : index
    %c0_16 = arith.constant 0 : index
    %17 = vector.load %arg7[%c0_15, %c0_16] : memref<1x1xf32, #tpu.memory_space<vmem>>, vector<1x1xf32>
    %18 = vector.broadcast %17 : vector<1x1xf32> to vector<8x1xf32>
    %19 = arith.addf %16, %18 : vector<8x1xf32>
    %20 = math.absf %19 : vector<8x1xf32>
    %cst_17 = arith.constant 0.000000e+00 : f32
    %21 = vector.broadcast %cst_17 : f32 to vector<8x1xf32>
    %22 = arith.subf %21, %20 : vector<8x1xf32>
    %23 = math.exp %22 : vector<8x1xf32>
    %cst_18 = arith.constant 0.000000e+00 : f32
    %24 = vector.broadcast %cst_18 : f32 to vector<8x1xf32>
    %25 = arith.cmpf oge, %19, %24 : vector<8x1xf32>
    %cst_19 = arith.constant 1.000000e+00 : f32
    %26 = vector.broadcast %cst_19 : f32 to vector<8x1xf32>
    %27 = arith.select %25, %26, %23 : vector<8x1xi1>, vector<8x1xf32>
    %cst_20 = arith.constant 1.000000e+00 : f32
    %28 = vector.broadcast %cst_20 : f32 to vector<8x1xf32>
    %29 = arith.addf %28, %23 : vector<8x1xf32>
    %30 = arith.divf %27, %29 : vector<8x1xf32>
    %c0_21 = arith.constant 0 : index
    %c0_22 = arith.constant 0 : index
    %31 = vector.load %arg8[%c0_21, %c0_22] : memref<8x1xf32, #tpu.memory_space<vmem>>, vector<8x1xf32>
    tpu.vector_store %arg8[%c0_21, %c0_22], %30 {strides = array<i32>} : memref<8x1xf32, #tpu.memory_space<vmem>>, vector<8x1xf32>,
    return
  }
  func.func @transform_0(%arg0: i32) -> (i32, i32) {
    %c0_i32 = arith.constant 0 : i32
    %c0_i32_0 = arith.constant 0 : i32
    return %arg0, %c0_i32 : i32, i32
  }
  func.func @transform_1(%arg0: i32) -> (i32, i32) {
    %c0_i32 = arith.constant 0 : i32
    %c0_i32_0 = arith.constant 0 : i32
    %c0_i32_1 = arith.constant 0 : i32
    return %c0_i32, %c0_i32_0 : i32, i32
  }
  func.func @transform_2(%arg0: i32) -> (i32, i32) {
    %c0_i32 = arith.constant 0 : i32
    %c0_i32_0 = arith.constant 0 : i32
    %c0_i32_1 = arith.constant 0 : i32
    return %c0_i32, %c0_i32_0 : i32, i32
  }
  func.func @transform_3(%arg0: i32) -> (i32, i32) {
    %c0_i32 = arith.constant 0 : i32
    %c0_i32_0 = arith.constant 0 : i32
    %c0_i32_1 = arith.constant 0 : i32
    return %c0_i32, %c0_i32_0 : i32, i32
  }
  func.func @transform_4(%arg0: i32) -> (i32, i32) {
    %c0_i32 = arith.constant 0 : i32
    %c0_i32_0 = arith.constant 0 : i32
    %c0_i32_1 = arith.constant 0 : i32
    return %c0_i32, %c0_i32_0 : i32, i32
  }
  func.func @transform_5(%arg0: i32) -> (i32, i32) {
    %c0_i32 = arith.constant 0 : i32
    %c0_i32_0 = arith.constant 0 : i32
    %c0_i32_1 = arith.constant 0 : i32
    return %c0_i32, %c0_i32_0 : i32, i32
  }
  func.func @transform_6(%arg0: i32) -> (i32, i32) {
    %c0_i32 = arith.constant 0 : i32
    %c0_i32_0 = arith.constant 0 : i32
    %c0_i32_1 = arith.constant 0 : i32
    return %c0_i32, %c0_i32_0 : i32, i32
  }
  func.func @transform_7(%arg0: i32) -> (i32, i32) {
    %c0_i32 = arith.constant 0 : i32
    %c0_i32_0 = arith.constant 0 : i32
    return %arg0, %c0_i32 : i32, i32
  }
}

</mosaic_0001>

<bundles_post_ra>
// kernel: tpu_custom_call.1
= control target key start
LH: loop header
LB: loop body
LE: loop exit
PB: predicated region body
PF: predicated region fallthrough
CT: control target
= control target key end

     0   :  { %s305_s0 = inlined_call_operand.vmem [shape: f32[4,61], index: 0, kind: input, shape index: {}]   ;;  %s306_s1 = inlined_call_operand.vmem [shape: f32[61,11], index: 1, kind: input, shape index: {}]   ;;  %s307_s2 = inlined_call_operand.vmem [shape: f32[1,11], index: 2, kind: input, shape index: {}]   ;;  %s308_s3 = inlined_call_operand.vmem [shape: f32[11,5], index: 3, kind: input, shape index: {}]   ;;  %s309_s4 = inlined_call_operand.vmem [shape: f32[1,5], index: 4, kind: input, shape index: {}]   ;;  %s310_s5 = inlined_call_operand.vmem [shape: f32[5,1], index: 5, kind: input, shape index: {}]   ;;  %s311_s6 = inlined_call_operand.<no memory space> [shape: f32[1,1], index: 6, kind: input, shape index: {}]   ;;  %s312_s7 = inlined_call_operand.vmem [shape: f32[4,1], index: 7, kind: output, shape index: {}]  }
   0x1   :  { %v12_v0 = vstv %s311_s6 }
   0x2   :  { %13 = vst [vmem:[#allocation2] sm:$0x1] %v12_v0 }
   0x3   :  { %v36_v1 = vld [vmem:[%s306_s1 + $0x38] sm:$0x1f]  ;;  %vm45_vm0 = vcmask 1044480   ;;  %v35_v2 = vld [vmem:[%s306_s1 + $0x30] sm:$0xff]  ;;  %v34_v3 = vld [vmem:[%s306_s1 + $0x28] sm:$0xff]  ;;  %vm41_vm1 = vcmask 498688  }
   0x4   :  { %202 = vmatpush.msk.msra.mxu0 %vm45_vm0, %v36_v1  ;;  %v33_v4 = vld [vmem:[%s306_s1 + $0x20] sm:$0xff]  ;;  %v32_v5 = vld [vmem:[%s306_s1 + $0x18] sm:$0xff]  ;;  %v31_v6 = vld [vmem:[%s306_s1 + $0x10] sm:$0xff]  ;;  %vm80_vm2 = vcmask 1042432   ;;  %vm76_vm3 = vcmask 89088   ;;  %vm110_vm4 = vcmask 39936  }
   0x5   :  { %v30_v7 = vld [vmem:[%s306_s1 + $0x8] sm:$0xff]  ;;  %v29_v8 = vld [vmem:[%s306_s1] sm:$0xff]  ;;  %vm159_vm10 = vcmask 7168  }
   0x6   :  { %58 = vmatpush.msra.mxu0 %v35_v2  ;;  %v28_v9 = vld [vmem:[%s305_s0] sm:$0xff]  ;;  %v71_v10 = vld [vmem:[%s308_s3 + $0x8] sm:$0x7] }
   0x7   :  { %204 = vmatpush.msk.msra.mxu1 %vm80_vm2, %v71_v10  ;;  %v70_v11 = vld [vmem:[%s308_s3] sm:$0xff] }
   0x8   :  { %59 = vmatpush.msra.mxu0 %v34_v3  ;;  %v208_v12 = vld [vmem:[%s307_s2] ss:$0 sm:$0xff] }
   0x9   :  { %99 = vmatpush.msra.mxu1 %v70_v11  ;;  %v105_v16 = vld [vmem:[%s310_s5] sm:$0x1f] }
   0xa   :  { %60 = vmatpush.msra.mxu0 %v33_v4  ;;  %206 = vmatpush.msk.msra.mxu2 %vm45_vm0, %v105_v16  ;;  %v209_v17 = vld [vmem:[%s309_s4] ss:$0 sm:$0xff] }
   0xb   :  { %v210_v21 = vld [vmem:[#allocation2] ss:$0 sm:$0xff] }
   0xc   :  { %61 = vmatpush.msra.mxu0 %v32_v5 }
   0xe   :  { %62 = vmatpush.msra.mxu0 %v31_v6 }
  0x10   :  { %63 = vmatpush.msra.mxu0 %v30_v7 }
  0x12   :  { %64 = vmatpush.msra.mxu0 %v29_v8 }
  0x13   :  { %203 = vmatmul.msk.f32.vlgmr.msra.gmra.mxu0 %vm41_vm1, %v28_v9 }
  0x90   :  { %v66_v13 = vpop.f32.mrf.mxu0 }
  0x91   :  { %v67_v14 = vadd.f32 %v208_v12, %v66_v13 }
  0x93   :  { %v69_v15 = vmax.f32 %v67_v14, 0.0 }
  0x95   :  { %205 = vmatmul.msk.f32.vlgmr.msra.gmra.mxu1 %vm76_vm3, %v69_v15 }
 0x112   :  { %v101_v18 = vpop.f32.mrf.mxu1 }
 0x113   :  { %v102_v19 = vadd.f32 %v209_v17, %v101_v18 }
 0x115   :  { %v104_v20 = vmax.f32 %v102_v19, 0.0 }
 0x117   :  { %207 = vmatmul.msk.f32.vlgmr.msra.gmra.mxu2 %vm110_vm4, %v104_v20 }
 0x19a   :  { %v134_v22 = vpop.f32.mrf.mxu2 }
 0x19b   :  { %v135_v23 = vadd.f32 %v210_v21, %v134_v22 }
 0x19d   :  { %v137_v24 = vand.u32 2147483647, %v135_v23  ;;  %vm141_vm8 = vcmp.ge.f32.partialorder %v135_v23, 0.0 }
 0x19f   :  { %v138_v25 = vsub.f32 0.0, %v137_v24 }
 0x1a1   :  { %v139_v26 = vmul.f32 1.442695, %v138_v25 }
 0x1a3   :  { %211 = vpow2.f32 %v139_v26 }
 0x1a9   :  { %v212_v27 = vpop.eup %211 }
 0x1aa   :  { %v143_v28 = vadd.f32 1.0, %v212_v27  ;;  %v142_v38 = vsel %vm141_vm8, 1.0, %v212_v27 }
 0x1ac   :  { %213 = vrcp.f32 %v143_v28  ;;  %v155_v32 = vand.u32 2147483648, %v143_v28  ;;  %v153_v34 = vand.u32 2147483647, %v143_v28  ;;  %vm149_vm6 = vweird.f32 %v143_v28 }
 0x1ae   :  { %v156_v36 = vor.u32 1.1754944e-38, %v155_v32  ;;  %vm154_vm9 = vcmp.eq.f32.partialorder %v153_v34, 8.507059e+37 }
 0x1b2   :  { %v214_v29 = vpop.eup %213 }
 0x1b3   :  { %v145_v30 = vmul.f32 %v214_v29, %v143_v28  ;;  %vm150_vm5 = vweird.f32 %v214_v29 }
 0x1b4   :  { %vm151_vm7 = vmor %vm149_vm6, %vm150_vm5 }
 0x1b5   :  { %v146_v31 = vsub.f32 1.0, %v145_v30 }
 0x1b7   :  { %v147_v33 = vmul.f32 %v214_v29, %v146_v31 }
 0x1b9   :  { %v148_v35 = vadd.f32 %v214_v29, %v147_v33 }
 0x1bb   :  { %v152_v37 = vsel %vm151_vm7, %v214_v29, %v148_v35 }
 0x1bc   :  { %v157_v39 = vsel %vm154_vm9, %v156_v36, %v152_v37 }
 0x1bd   :  { %v158_v40 = vmul.f32 %v157_v39, %v142_v38 }
 0x1bf   :  { %160 = vst.msk [vmem:[#allocation3] sm:$0xff] %vm159_vm10, %v158_v40 }
 0x1c6   :  { %v179_v41 = vld [vmem:[#allocation3] sm:$0xf] }
 0x1c7   :  { %180 = vst [vmem:[%s312_s7] sm:$0xf] %v179_v41 }

</bundles_post_ra>
